<compile_context>
chip_gen: v7x
topology: tpu7x:2x2x1
jax: 0.10.0
libtpu: 0.0.40
codegen_flags: <defaults>
</compile_context>

<pallas_src>
import functools

import jax
import jax.numpy as jnp
from jax.experimental import pallas as pl
from jax.experimental.pallas import tpu as pltpu

_LANE = 128
_SUBLANE = 8


def _vmem_capacity_bytes():
    """Physical VMEM of the current device; conservative (v7x) fallback."""
    try:
        cap = int(pltpu.get_tpu_info().vmem_capacity_bytes)
        if cap > 0:
            return cap
    except Exception:
        pass
    return 64 * 1024 * 1024


def _pick_tile_n(n, c, vmem_budget, min_grid_steps):
    """Largest row tile whose double-buffered, lane-padded footprint fits VMEM."""
    c_pad = pl.cdiv(c, _LANE) * _LANE
    row_bytes = c_pad * 4                      # lane-padded VMEM bytes per probs row
    # One probs buffer gets ~1/8 of the scoped limit: 2 pipeline buffers plus a few
    # block-sized compute temporaries (one-hot select, masked loss) must all fit
    # with headroom on v7x's 64 MiB as well as v5e/v6e's 128 MiB.
    per_buf = max(row_bytes, vmem_budget // 8)
    cap = max(_SUBLANE, per_buf // row_bytes)
    # Keep raw HBM traffic per step at <= ~8 MiB so the software pipeline retains
    # several steps of DMA/compute overlap.
    cap = min(cap, max(_SUBLANE, (8 * 1024 * 1024) // (c * 4)))
    if min_grid_steps > 1:
        step_cap = pl.cdiv(n, min_grid_steps)
        if step_cap >= _LANE:                  # don't force tiny tiles on small N
            cap = min(cap, step_cap)
    if cap >= _LANE:
        cap = (cap // _LANE) * _LANE           # lane-aligned target / 'none' output
    else:
        cap = max(_SUBLANE, (cap // _SUBLANE) * _SUBLANE)   # huge-C fallback
    # TODO(synk): for extreme C where even an 8-row tile exceeds the VMEM budget, a
    # class-axis grid dimension with masked accumulation would be required.
    return n if n <= cap else cap


def _gather_target_loss(p_ref, t_ref, w_ref, *, clip, has_weight):
    """Per-row loss -log(max(p[i,t[i]],clip)) * w[t[i]]  ->  (tile_n, 1) f32."""
    p = p_ref[...]                                        # (tile_n, C) f32
    tn, c = p.shape
    t = t_ref[...]
    if t.shape[0] == 1:                                   # lane-dense (1, tile_n) row
        t = jnp.transpose(t)                              # cheap XLU relayout -> (tile_n, 1)
    col = jax.lax.broadcasted_iota(jnp.int32, (tn, c), 1)
    onehot = col == t                                     # (tile_n, C) one-hot of target
    # Gather first, then log: O(tile_n) EUP transcendentals instead of O(tile_n*C).
    p_sel = jnp.sum(jnp.where(onehot, p, 0.0), axis=-1, keepdims=True)
    loss = -jnp.log(jnp.maximum(p_sel, clip))
    if has_weight:
        w_sel = jnp.sum(jnp.where(onehot, w_ref[...], 0.0), axis=-1, keepdims=True)
        loss = loss * w_sel
    return loss                                           # (tile_n, 1)


def _logloss_reduce_kernel(p_ref, t_ref, w_ref, o_ref, *, clip, has_weight,
                           n_total, tile_n, tiles_per_core):
    core = pl.program_id(0)
    step = pl.program_id(1)

    @pl.when(step == 0)
    def _init():
        o_ref[...] = jnp.zeros_like(o_ref)

    loss = _gather_target_loss(p_ref, t_ref, w_ref, clip=clip, has_weight=has_weight)
    # Mask (a) rows past N in the final partial tile and (b) whole duplicated tiles
    # read by the second core when the tile count is odd (index_map clamps them).
    gtile = core * tiles_per_core + step
    row = gtile * tile_n + jax.lax.broadcasted_iota(jnp.int32, loss.shape, 0)
    loss = jnp.where(row < n_total, loss, 0.0)
    o_ref[...] += jnp.sum(loss).reshape(1, 1, 1)


def _logloss_none_kernel(p_ref, t_ref, w_ref, o_ref, *, clip, has_weight,
                         n_total, tile_n):
    loss = _gather_target_loss(p_ref, t_ref, w_ref, clip=clip, has_weight=has_weight)
    row = pl.program_id(0) * tile_n + jax.lax.broadcasted_iota(jnp.int32, loss.shape, 0)
    loss = jnp.where(row < n_total, loss, 0.0)             # zero the overhang rows
    if o_ref.shape[0] == 1:
        o_ref[...] = jnp.transpose(loss)                   # lane-dense (1, tile_n) row
    else:
        o_ref[...] = loss                                  # (tile_n, 1) huge-C fallback


def log_loss(probs, target, weight=None, reduction="mean", clip=1e-10, tile_n=None):
    """Pallas TPU implementation of pyhealth LogLoss.forward."""
    assert probs.ndim == 2, f"Expected 2 dimensions (got {probs.ndim})"
    n, c = probs.shape
    probs = probs.astype(jnp.float32)
    target = target.astype(jnp.int32)
    has_weight = weight is not None
    w2d = (weight.astype(jnp.float32).reshape(1, c) if has_weight
           else jnp.ones((1, c), dtype=jnp.float32))

    vmem_limit = int(_vmem_capacity_bytes() * 0.7)   # ~45 MiB on v7x, ~90 MiB v5e/v6e

    min_steps = 4 if reduction == "none" else 2
    if tile_n is None:
        tile_n = _pick_tile_n(n, c, vmem_limit, min_steps)
    tile_n = min(int(tile_n), n)
    if tile_n != n and tile_n % _LANE != 0:
        tile_n = max(_SUBLANE, (tile_n // _SUBLANE) * _SUBLANE)   # sublane-align
    lane_dense = (tile_n == n) or (tile_n % _LANE == 0)
    tiles_total = pl.cdiv(n, tile_n)

    # Target layout: lane-dense (1, N) row when tiles are 128-aligned (contiguous
    # 128-lane DMA, ~128x less VMEM than a (tile_n, 1) column); column fallback for
    # the huge-C small-tile path.
    t_arr = target.reshape(1, n) if lane_dense else target.reshape(n, 1)
    common = dict(clip=float(clip), has_weight=has_weight)

    if reduction in ("mean", "sum"):
        # Shard row tiles across 2 cores (v7x megacore); single-TC chips just
        # iterate both halves sequentially with no extra cost.
        tiles_per_core = pl.cdiv(tiles_total, 2)

        def tile_idx(core, i):
            return jnp.minimum(core * tiles_per_core + i, tiles_total - 1)

        if lane_dense:
            t_spec = pl.BlockSpec((1, tile_n), lambda core, i: (0, tile_idx(core, i)))
        else:
            t_spec = pl.BlockSpec((tile_n, 1), lambda core, i: (tile_idx(core, i), 0))
        in_specs = [
            pl.BlockSpec((tile_n, c), lambda core, i: (tile_idx(core, i), 0)),
            t_spec,
            pl.BlockSpec((1, c), lambda core, i: (0, 0)),   # weights, VMEM-resident
        ]
        kernel = functools.partial(_logloss_reduce_kernel, n_total=n, tile_n=tile_n,
                                   tiles_per_core=tiles_per_core, **common)
        partials = pl.pallas_call(
            kernel,
            out_shape=jax.ShapeDtypeStruct((2, 1, 1), jnp.float32),
            grid=(2, tiles_per_core),
            in_specs=in_specs,
            out_specs=pl.BlockSpec((1, 1, 1), lambda core, i: (core, 0, 0)),
            compiler_params=pltpu.CompilerParams(
                dimension_semantics=("parallel", "arbitrary"),
                vmem_limit_bytes=vmem_limit),
        )(probs, t_arr, w2d)
        total = jnp.sum(partials)
        if reduction == "mean":
            return total / jnp.float32(n)     # matches agg_loss: divide by N
        return total

    # reduction == 'none'
    if lane_dense:
        t_spec = pl.BlockSpec((1, tile_n), lambda i: (0, i))
        out_shape = jax.ShapeDtypeStruct((1, n), jnp.float32)
        out_spec = pl.BlockSpec((1, tile_n), lambda i: (0, i))   # lane-dense rows
    else:
        t_spec = pl.BlockSpec((tile_n, 1), lambda i: (i, 0))
        out_shape = jax.ShapeDtypeStruct((n, 1), jnp.float32)
        out_spec = pl.BlockSpec((tile_n, 1), lambda i: (i, 0))
    in_specs = [
        pl.BlockSpec((tile_n, c), lambda i: (i, 0)),
        t_spec,
        pl.BlockSpec((1, c), lambda i: (0, 0)),
    ]
    kernel = functools.partial(_logloss_none_kernel, n_total=n, tile_n=tile_n, **common)
    out = pl.pallas_call(
        kernel,
        out_shape=out_shape,
        grid=(tiles_total,),
        in_specs=in_specs,
        out_specs=out_spec,
        compiler_params=pltpu.CompilerParams(
            dimension_semantics=("parallel",),   # v7x: shard row tiles across both TCs
            vmem_limit_bytes=vmem_limit),
    )(probs, t_arr, w2d)
    return out[0] if lane_dense else out[:, 0]


def _reference(probs, target, weight, reduction, clip):
    p = jnp.maximum(probs.astype(jnp.float32), clip)
    nll = -jnp.log(p)
    if weight is not None:
        nll = nll * weight[None, :]
    loss = jnp.take_along_axis(nll, target[:, None].astype(jnp.int32), axis=-1)[:, 0]
    if reduction == "mean":
        return loss.mean()
    if reduction == "sum":
        return loss.sum()
    return loss


if __name__ == "__main__":
    key = jax.random.PRNGKey(0)
    failures = []
    # Configs: single-tile path; multi 128-row tiles + partial last tile (auto picker
    # also hits this for mean/sum); forced 64-row tiles to exercise the small-tile
    # (non-lane-dense target / column output) fallback.
    for n, c, forced_tile in ((8, 32, None), (300, 32, 128), (300, 32, 64)):
        cfg_key = jax.random.fold_in(key, n * 1000 + (forced_tile or 0))
        k1, k2, k3 = jax.random.split(cfg_key, 3)
        logits = jax.random.normal(k1, (n, c), dtype=jnp.float32)
        probs = jax.nn.softmax(logits, axis=-1)            # "input" is a probability
        target = jax.random.randint(k2, (n,), 0, c, dtype=jnp.int32)
        weight = jax.random.uniform(k3, (c,), dtype=jnp.float32) + 0.5

        for reduction in ("mean", "sum", "none"):
            for w in (None, weight):
                out = jax.block_until_ready(
                    log_loss(probs, target, weight=w, reduction=reduction,
                             tile_n=forced_tile))
                ref = _reference(probs, target, w, reduction, 1e-10)
                if not bool(jnp.allclose(out, ref, rtol=1e-5, atol=1e-6)):
                    failures.append((n, c, forced_tile, reduction, w is not None))

    if failures:
        raise AssertionError(f"Mismatches vs reference: {failures}")
    print("KERNEL_OK")
</pallas_src>

<mosaic_0001>
module attributes {stable_mosaic.version = 11 : i64} {
  func.func @_logloss_reduce_kernel(%arg0: i32, %arg1: i32, %arg2: memref<8x32xf32, #tpu.memory_space<vmem>>, %arg3: memref<1x8xi32, #tpu.memory_space<vmem>>, %arg4: memref<1x32xf32, #tpu.memory_space<vmem>>, %arg5: memref<1x1x1xf32, #tpu.memory_space<vmem>>) attributes {dimension_semantics = [#tpu.dimension_semantics<parallel>, #tpu.dimension_semantics<arbitrary>], iteration_bounds = array<i64: 2, 1>, scalar_prefetch = 0 : i64, scratch_operands = 0 : i64, tpu.core_type = #tpu.core_type<tc>, window_params = [{transform_indices = @transform_0, window_bounds = array<i64: 8, 32>}, {transform_indices = @transform_1, window_bounds = array<i64: 1, 8>}, {pipeline_mode = #tpu.pipeline_mode<synchronous>, transform_indices = @transform_2, window_bounds = array<i64: 1, 32>}, {transform_indices = @transform_3, window_bounds = array<i64: 1, 1, 1>}]} {
    %c0_i32 = arith.constant 0 : i32
    %0 = arith.cmpi eq, %arg1, %c0_i32 : i32
    %1 = arith.extui %0 : i1 to i32
    %c0_i32_0 = arith.constant 0 : i32
    %2 = arith.cmpi ne, %1, %c0_i32_0 : i32
    scf.if %2 {
      %cst_16 = arith.constant 0.000000e+00 : f32
      %36 = vector.broadcast %cst_16 : f32 to vector<1x1x1xf32>
      %c0_17 = arith.constant 0 : index
      %c0_18 = arith.constant 0 : index
      %c0_19 = arith.constant 0 : index
      %37 = vector.load %arg5[%c0_17, %c0_18, %c0_19] : memref<1x1x1xf32, #tpu.memory_space<vmem>>, vector<1x1x1xf32>
      tpu.vector_store %arg5[%c0_17, %c0_18, %c0_19], %36 {strides = array<i32>} : memref<1x1x1xf32, #tpu.memory_space<vmem>>, vector<1x1x1xf32>,
    } else {
    }
    %c0 = arith.constant 0 : index
    %c0_1 = arith.constant 0 : index
    %3 = vector.load %arg2[%c0, %c0_1] : memref<8x32xf32, #tpu.memory_space<vmem>>, vector<8x32xf32>
    %c0_2 = arith.constant 0 : index
    %c0_3 = arith.constant 0 : index
    %4 = vector.load %arg3[%c0_2, %c0_3] : memref<1x8xi32, #tpu.memory_space<vmem>>, vector<1x8xi32>
    %5 = tpu.transpose %4, [1, 0] : vector<1x8xi32> -> vector<8x1xi32>
    %6 = tpu.iota {dimensions = array<i32: 1>} : vector<8x32xi32>
    %7 = vector.broadcast %5 : vector<8x1xi32> to vector<8x32xi32>
    %8 = arith.cmpi eq, %6, %7 : vector<8x32xi32>
    %cst = arith.constant 0.000000e+00 : f32
    %9 = vector.broadcast %cst : f32 to vector<8x32xf32>
    %10 = arith.select %8, %3, %9 : vector<8x32xi1>, vector<8x32xf32>
    %cst_4 = arith.constant dense<0.000000e+00> : vector<8xf32>
    %11 = vector.multi_reduction <add>, %10, %cst_4 [1] : vector<8x32xf32> to vector<8xf32>
    %12 = vector.shape_cast %11 : vector<8xf32> to vector<8x1xf32>
    %cst_5 = arith.constant 1.000000e-10 : f32
    %13 = vector.broadcast %cst_5 : f32 to vector<8x1xf32>
    %14 = arith.maximumf %12, %13 : vector<8x1xf32>
    %15 = math.log %14 : vector<8x1xf32>
    %cst_6 = arith.constant 0.000000e+00 : f32
    %16 = vector.broadcast %cst_6 : f32 to vector<8x1xf32>
    %17 = arith.subf %16, %15 : vector<8x1xf32>
    %c1_i32 = arith.constant 1 : i32
    %18 = arith.muli %arg0, %c1_i32 : i32
    %19 = arith.addi %18, %arg1 : i32
    %c8_i32 = arith.constant 8 : i32
    %20 = arith.muli %19, %c8_i32 : i32
    %21 = tpu.iota {dimensions = array<i32: 0>} : vector<8x1xi32>
    %22 = vector.broadcast %20 : i32 to vector<8x1xi32>
    %23 = arith.addi %22, %21 : vector<8x1xi32>
    %c8_i32_7 = arith.constant 8 : i32
    %24 = vector.broadcast %c8_i32_7 : i32 to vector<8x1xi32>
    %25 = arith.cmpi slt, %23, %24 : vector<8x1xi32>
    %cst_8 = arith.constant 0.000000e+00 : f32
    %26 = vector.broadcast %cst_8 : f32 to vector<8x1xf32>
    %27 = arith.select %25, %17, %26 : vector<8x1xi1>, vector<8x1xf32>
    %c0_9 = arith.constant 0 : index
    %c0_10 = arith.constant 0 : index
    %c0_11 = arith.constant 0 : index
    %28 = vector.load %arg5[%c0_9, %c0_10, %c0_11] : memref<1x1x1xf32, #tpu.memory_space<vmem>>, vector<1x1x1xf32>
    %29 = vector.shape_cast %27 : vector<8x1xf32> to vector<1x8x1xf32>
    %cst_12 = arith.constant dense<0.000000e+00> : vector<1xf32>
    %30 = vector.multi_reduction <add>, %29, %cst_12 [1, 2] : vector<1x8x1xf32> to vector<1xf32>
    %31 = vector.shape_cast %30 : vector<1xf32> to vector<1x1x1xf32>
    %32 = vector.extract %31[0, 0, 0] : f32 from vector<1x1x1xf32>
    %33 = vector.broadcast %32 : f32 to vector<1x1x1xf32>
    %34 = arith.addf %28, %33 : vector<1x1x1xf32>
    %c0_13 = arith.constant 0 : index
    %c0_14 = arith.constant 0 : index
    %c0_15 = arith.constant 0 : index
    %35 = vector.load %arg5[%c0_13, %c0_14, %c0_15] : memref<1x1x1xf32, #tpu.memory_space<vmem>>, vector<1x1x1xf32>
    tpu.vector_store %arg5[%c0_13, %c0_14, %c0_15], %34 {strides = array<i32>} : memref<1x1x1xf32, #tpu.memory_space<vmem>>, vector<1x1x1xf32>,
    return
  }
  func.func @transform_0(%arg0: i32, %arg1: i32) -> (i32, i32) {
    %c1_i32 = arith.constant 1 : i32
    %0 = arith.muli %arg0, %c1_i32 : i32
    %1 = arith.addi %0, %arg1 : i32
    %c0_i32 = arith.constant 0 : i32
    %2 = arith.minsi %1, %c0_i32 : i32
    %c0_i32_0 = arith.constant 0 : i32
    %c0_i32_1 = arith.constant 0 : i32
    return %2, %c0_i32_0 : i32, i32
  }
  func.func @transform_1(%arg0: i32, %arg1: i32) -> (i32, i32) {
    %c1_i32 = arith.constant 1 : i32
    %0 = arith.muli %arg0, %c1_i32 : i32
    %1 = arith.addi %0, %arg1 : i32
    %c0_i32 = arith.constant 0 : i32
    %2 = arith.minsi %1, %c0_i32 : i32
    %c0_i32_0 = arith.constant 0 : i32
    %c0_i32_1 = arith.constant 0 : i32
    return %c0_i32_0, %2 : i32, i32
  }
  func.func @transform_2(%arg0: i32, %arg1: i32) -> (i32, i32) {
    %c0_i32 = arith.constant 0 : i32
    %c0_i32_0 = arith.constant 0 : i32
    %c0_i32_1 = arith.constant 0 : i32
    return %c0_i32, %c0_i32_0 : i32, i32
  }
  func.func @transform_3(%arg0: i32, %arg1: i32) -> (i32, i32, i32) {
    %c0_i32 = arith.constant 0 : i32
    %c0_i32_0 = arith.constant 0 : i32
    %c0_i32_1 = arith.constant 0 : i32
    return %arg0, %c0_i32, %c0_i32_0 : i32, i32, i32
  }
}

</mosaic_0001>

<bundles_post_ra>
// kernel: tpu_custom_call.1
= control target key start
LH: loop header
LB: loop body
LE: loop exit
PB: predicated region body
PF: predicated region fallthrough
CT: control target
= control target key end

     0   :  { %8 = vsyncpa [#allocation3], 0  ;;  %s669_s0 = inlined_call_operand.hbm [shape: f32[8,32], index: 0, kind: input, shape index: {}]   ;;  %s670_s1 = inlined_call_operand.vmem [shape: s32[1,8], index: 1, kind: input, shape index: {}]   ;;  %s671_s2 = inlined_call_operand.vmem [shape: f32[1,32], index: 2, kind: input, shape index: {}]   ;;  %s672_s3 = inlined_call_operand.vmem [shape: f32[2,1,1], index: 3, kind: output, shape index: {}]  }
   0x1   :  { %10 = vsyncpa [#allocation3 + $0x1], 0  ;;  %s576_s12 = smov 0   ;;  %s578_s13 = smov 0  }
   0x2   :  { %s580_s14 = smov 0   ;;  %s582_s15 = smov 0  }
   0x3   :  { %s584_s16 = smov 0  }
   0x4 LB: > { %s398_s2 = sadd.s32 4294967295, %s551_s16   ;;  %s28_s17 = sadd.s32 1, %s547_s15  ;;  %s551_s16 = sphi %s584_s16, %s16_s16   ;;  %s547_s15 = sphi %s582_s15, %s683_s15   ;;  %s543_s14 = sphi %s580_s14, %s682_s14   ;;  %s539_s13 = sphi %s578_s13, %s659_s13   ;;  %s535_s12 = sphi %s576_s12, %s681_s12  }
   0x5   : > { %p30_p0 = scmp.ge.s32.totalorder %s28_s17, 2  ;;  %p532_p1 = scmp.ne.s32.totalorder %s539_s13, 0 }
   0x6   : > { %p49_p2 = scmp.eq.s32.totalorder %s551_s16, 0  ;;  %p54_p3 = scmp.ne.s32.totalorder %s539_s13, %s535_s12 }
   0x7   : > { %s685_s17 = smov (%p30_p0, %s28_s17), 0  ;;  %p55_p4 = scmp.eq.s32.totalorder %s398_s2, 0 }
   0x8   : > { %p50_p5 = por %p532_p1, %p49_p2  ;;  %p420_p7 = scmp.lt.s32.totalorder %s551_s16, 2 }
   0x9   : > { %p606_p6 = por %p55_p4, %p54_p3  ;;  %s553_s19 = smov [#allocation2]  }
   0xa   : > { %s174_s20 = sshll.u32 %s553_s19, 4  ;;  %p611_p8 = pnand %p420_p7, %p50_p5  ;;  %s175_s20 = int_to_ptr.vmem [resolvable:$true] %s174_s20 }
   0xb   : > { %s675_s18 = scalar_select %p606_p6, 1, 0 }
   0xc   : > { %s676_s21 = scalar_select %p611_p8, 1, 0 }
   0xd   : > { %s474_s24 = scalar_lea.hbm %s669_s0, 128  ;;  %p476_p12 = pneg %p611_p8 }
   0xe   : > { %p475_p11 = scmp.ne.s32.totalorder %s669_s0, %s474_s24  ;;  %p481_p1 = scmp.lt.u32.totalorder %s474_s24, %s474_s24 }
   0xf   : > { %p483_p2 = scmp.lt.u32.totalorder %s474_s24, %s669_s0 }
  0x10   : > { %p477_p13 = pnand %p476_p12, %p475_p11 }
  0x11   : > { %p484_p3 = por %p483_p2, %p481_p1 }
  0x12   : > { %p478_p0 = pneg %p477_p13 }
  0x14   : > { %p485_p4 = pnand %p484_p3, %p478_p0 }
  0x16   : > { %488 = shalt.err (!%p485_p4)
}
  0x17   : > { %s489_s29 = scalar_lea.vmem %s175_s20, 128  ;;  %s496_s30 = scalar_lea.vmem %s175_s20, 256 }
  0x18   : > { %p490_p5 = scmp.ne.s32.totalorder %s175_s20, %s489_s29  ;;  %p497_p10 = scmp.lt.s32.totalorder %s175_s20, %s175_s20 }
  0x19   : > { %p498_p6 = scmp.lt.s32.totalorder %s496_s30, %s489_s29 }
  0x1a   : > { %p492_p7 = pnand %p490_p5, %p476_p12 }
  0x1b   : > { %p499_p8 = por %p498_p6, %p497_p10 }
  0x1c   : > { %p493_p9 = pneg %p492_p7 }
  0x1e   : > { %p500_p11 = pnand %p499_p8, %p493_p9 }
  0x20   : > { %503 = shalt.err (!%p500_p11)
}
  0x21   : > { %p677_p13 = scmp.ne.s32.totalorder %s676_s21, 0  ;;  %p678_p0 = scmp.lt.s32.totalorder %s551_s16, 3 }
  0x22   : > { %p679_p1 = scmp.ge.s32.totalorder %s551_s16, 1 }
  0x23   : > { %419 = dma.hbm_to_vmem [thread:$0]  (!%p677_p13), %s669_s0, 128, %s175_s20, [#allocation3]  }
  0x24   : > { %p192_p2 = pnand %p679_p1, %p678_p0 }
  0x25   : > { %s197_s6 = sand.u32 (!%p192_p2), 1, %s539_s13   ;;  %p680_p6 = scmp.ne.s32.totalorder (!%p192_p2), %s675_s18, 0 }
  0x26   : > { %195 = sbr.rel (%p192_p2) target bundleno = 682 (0x2aa), region = 32  ;;  %s405_s7 = sshll.u32 (!%p192_p2), %s197_s6, 3 }
  0x27   : > { %s198_s8 = scalar_lea.sflag (!%p192_p2), [#allocation3], %s197_s6  ;;  %s201_s9 = scalar_lea.vmem (!%p192_p2), [#allocation2], %s405_s7 }
  0x2d   : > { %529 = dma.done.wait (%p680_p6), %s198_s8, 128  }
  0x2e   : > { %531 = vsyncadd (%p680_p6), %s198_s8, 4294967168  ;;  %p232_p8 = scmp.lt.s32.totalorder %s543_s14, 0  ;;  %v554_v1 = vmov 0   ;;  %v283_v3 = vlaneseq  ;;  %v249_v5 = vld [vmem:[%s201_s9] sm:$0xff]  ;;  %vm290_vm0 = vcmask 261120   ;;  %s409_s18 = sshll.u32 %s543_s14, 3 }
  0x2f   : > { %v302_v12 = vstv %s409_s18  ;;  %vm307_vm3 = vcmask 7168   ;;  %p240_p9 = scmp.lt.s32.totalorder %s543_s14, 1  ;;  %vm247_vm4 = vcmask 0   ;;  %v555_v19 = vmov 0.0  }
  0x30   : > { %s233_s10 = scalar_select %p232_p8, %s543_s14, 0  ;;  %v284_v4 = vand.u32 127, %v283_v3  ;;  %v301_v11 = vshrl.u32 %v283_v3, 7 }
  0x31   : > { %s689_s14 = smov (!%p240_p9, %s543_s14), 1 }
  0x32   : > { %s687_s10 = smov (!%p232_p8, %s233_s10), 0  ;;  %v303_v13 = vadd.s32 %v302_v12, %v301_v11  ;;  %s242_s21 = scalar_lea.vmem %s672_s3, %s689_s14 }
  0x33   : > { %s236_s2 = scalar_lea.vmem %s670_s1, %s687_s10  ;;  %248 = vst.msk [vmem:[%s242_s21] sm:$0x1] %vm247_vm4, %v555_v19 }
  0x34   : > { %v250_v0 = vld [vmem:[%s236_s2] sm:$0x1]  ;;  %vm304_vm2 = vcmp.lt.s32.totalorder %v303_v13, 8 }
  0x35   : > { %251 = vxpose.xlu0.b32.start.end [1/1] (short) (narrow) %v250_v0, 8 }
  0x3a   : > { %v306_v27 = vld [vmem:[%s242_s21] sm:$0x1] }
  0x5e   : > { %471 = vset.pattern.permute.xlu0 %v554_v1 }
  0xb5   : > { %v267_v2 = vpop.trf.xlu0 }
  0xb6   : > { %286 = vperm.xlu0 %471, %v267_v2  }
 0x135   : > { %v287_v6 = vpop.permute.xlu0 %286 }
 0x136   : > { %vm288_vm1 = vcmp.eq.s32.totalorder %v284_v4, %v287_v6 }
 0x137   : > { %v289_v7 = vsel %vm288_vm1, %v249_v5, 0.0 }
 0x138   : > { %v291_v8 = vsel %vm290_vm0, %v289_v7, 0.0 }
 0x139   : > { %292 = vadd.xlane.f32.xlu1 %v291_v8 }
 0x1c6   : > { %v293_v9 = vpop.xlane.xlu1 %292 }
 0x1c7   : > { %v294_v10 = vmax.f32 %v293_v9, 1e-10 }
 0x1c9   : > { %472 = vlog2.f32 %v294_v10 }
 0x1d3   : > { %v473_v14 = vpop.eup %472 }
 0x1d4   : > { %v296_v15 = vmul.f32 0.6931472, %v473_v14 }
 0x1d6   : > { %v297_v16 = vsub.f32 0.0, %v296_v15 }
 0x1d8   : > { %v305_v17 = vsel %vm304_vm2, %v297_v16, 0.0 }
 0x1d9   : > { %v308_v18 = vsel %vm307_vm3, %v305_v17, 0.0 }
 0x1da   : > { %309 = vadd.xlane.f32.xlu1 %v308_v18 }
 0x267   : > { %v310_v20 = vpop.xlane.xlu1 %309 }
 0x268   : > { %v311_v21 = vrot.slane %v310_v20, 4 }
 0x26a   : > { %v312_v22 = vadd.f32 %v311_v21, %v310_v20 }
 0x26c   : > { %v313_v23 = vrot.slane %v312_v22, 2 }
 0x26e   : > { %v314_v24 = vadd.f32 %v313_v23, %v312_v22 }
 0x270   : > { %v315_v25 = vrot.slane %v314_v24, 1 }
 0x272   : > { %v316_v26 = vadd.f32 %v315_v25, %v314_v24 }
 0x274   : > { %412 = vpush %v316_v26 }
 0x2a5   : > { %s413_s22 = spop %412 }
 0x2a6   : > { %v318_v28 = vstv %s413_s22 }
 0x2a7   : > { %v319_v29 = vadd.f32 %v318_v28, %v306_v27 }
 0x2a9   : > { %321 = vst.msk [vmem:[%s242_s21] sm:$0x1] %vm247_vm4, %v319_v29 }
 0x2aa PF: > { %s16_s16 = sadd.s32 1, %s551_s16   ;;  %s681_s12 = smov %s539_s13 }
 0x2ab   : > { %p13_p10 = scmp.ge.s32.totalorder %s16_s16, 4   ;;  %s659_s13 = smov 0  }
 0x2ac   : > { %s682_s14 = smov %s547_s15  ;;  %s683_s15 = smov %s685_s17 }
 0x2ad   :  { %15 = sbr.rel (!%p13_p10) target bundleno = 4 (0x4), region = 79 }
 0x2b4   :  { %339 = vsyncpa [#allocation3], 1 }
 0x2b5   :  { %341 = vsyncpa [#allocation3 + $0x1], 1 }

</bundles_post_ra>
